<compile_context>
chip_gen: v7x
topology: tpu7x:2x2x1
jax: 0.10.0
libtpu: 0.0.40
codegen_flags: <defaults>
</compile_context>

<pallas_src>
import functools

import jax
import jax.numpy as jnp
from jax import lax
from jax.experimental import pallas as pl
from jax.experimental.pallas import tpu as pltpu


def _cdiv(a, b):
    return -(-a // b)


def _round_up(x, m):
    return _cdiv(x, m) * m


# ---------------------------------------------------------------------------
# Kernel 1: global average pool (AdaptiveAvgPool2d((1, 1)))
# ---------------------------------------------------------------------------
def _pool_kernel(x_ref, o_ref, acc_ref, *, inv_hw, hw_blk, tail_valid):
    # x_ref  : (rows_tile, hw_blk)  current block of the (rows, hw) slab
    # o_ref  : (rows_tile, 1)       resident across the hw axis (same block idx)
    # acc_ref: (rows_tile, 128)     f32 lane-folded running sum (VMEM scratch)
    k = pl.program_id(1)
    last = pl.num_programs(1) - 1

    @pl.when(k == 0)
    def _init():
        acc_ref[...] = jnp.zeros_like(acc_ref)

    need_mask = tail_valid != hw_blk
    if need_mask:
        col = lax.broadcasted_iota(jnp.int32, (x_ref.shape[0], 128), 1)

    # Fold the hw block onto 128 lanes with VPU elementwise adds.  Each slice
    # is a static, 128-aligned read straight from the VMEM block (whole vregs,
    # lane-parallel VALU adds); the XLU runs once per row tile below.
    acc = acc_ref[...]
    for j in range(hw_blk // 128):
        xj = x_ref[:, j * 128:(j + 1) * 128].astype(jnp.float32)
        if need_mask:
            # Static per-chunk valid-lane count on the LAST hw block; chunks
            # fully inside the true H*W extent skip the select entirely.
            lim = min(max(tail_valid - j * 128, 0), 128)
            if lim < 128:
                limit = jnp.where(k == last, lim, 128)
                xj = jnp.where(col < limit, xj, 0.0)
        acc = acc + xj
    acc_ref[...] = acc

    @pl.when(k == last)
    def _finalize():
        s = jnp.sum(acc_ref[...], axis=-1, keepdims=True)  # one XLU reduce/tile
        o_ref[...] = (s * inv_hw).astype(o_ref.dtype)


def _global_avg_pool(x, *, hw_blk_max=2048, rows_tile_cap=2048,
                     step_bytes=4 << 20):
    """AdaptiveAvgPool2d((1,1)) for NCHW input; returns (N, C)."""
    N, C, H, W = x.shape
    rows = N * C
    hw = H * W
    x2d = x.reshape(rows, hw)

    itemsize = jnp.dtype(x.dtype).itemsize
    sub = max(8, 32 // max(itemsize, 1))        # sublane pack: 8 f32 / 16 bf16

    # hw blocking: multiples of 128 lanes; the trailing partial block only
    # DMAs the valid columns, the ragged tail is masked in-kernel (no jnp.pad).
    hw_blk = min(_round_up(hw, 128), _round_up(hw_blk_max, 128))
    n_hw = _cdiv(hw, hw_blk)
    tail_valid = hw - (n_hw - 1) * hw_blk

    # Row tiling: target ~step_bytes per grid step (amortize the fixed
    # ~0.35us/step pipeline cost) but keep >= 2 row tiles whenever the row
    # count allows it so ("parallel", ...) can shard across both v7x cores.
    rows_cap = _round_up(
        min(rows_tile_cap, max(sub, step_bytes // (hw_blk * itemsize))), sub)
    if rows > rows_cap:
        rows_tile = rows_cap
    elif rows >= 2 * sub:
        rows_tile = min(rows_cap, _round_up(_cdiv(rows, 2), sub))
    elif rows >= sub:
        rows_tile = sub
    else:
        rows_tile = rows                        # tiny input: one full block
    n_rows_t = _cdiv(rows, rows_tile)

    kernel = functools.partial(_pool_kernel, inv_hw=float(1.0 / hw),
                               hw_blk=hw_blk, tail_valid=tail_valid)

    pooled = pl.pallas_call(
        kernel,
        out_shape=jax.ShapeDtypeStruct((rows, 1), x.dtype),
        grid_spec=pltpu.PrefetchScalarGridSpec(
            num_scalar_prefetch=0,
            grid=(n_rows_t, n_hw),
            in_specs=[pl.BlockSpec((rows_tile, hw_blk), lambda i, k: (i, k))],
            # NOTE: the pooled-column writeback is rows*itemsize bytes,
            # amortized over rows*hw input bytes, so a lane-dense
            # (1, rows_tile) output layout gains little here.
            out_specs=pl.BlockSpec((rows_tile, 1), lambda i, k: (i, 0)),
            scratch_shapes=[pltpu.VMEM((rows_tile, 128), jnp.float32)],
        ),
        compiler_params=pltpu.CompilerParams(
            # rows are independent -> shard across TensorCores; the hw
            # reduction axis stays last and "arbitrary".
            dimension_semantics=("parallel", "arbitrary"),
        ),
    )(x2d)

    return pooled.reshape(N, C)


# ---------------------------------------------------------------------------
# Kernel 2: fc (nn.Linear), K-tiled
# ---------------------------------------------------------------------------
def _fc_kernel(x_ref, w_ref, b_ref, o_ref, acc_ref, *, tk, tail_valid):
    # x: (N, tk), w: (tk, out), b: (1, out), acc/o: (N, out)
    k = pl.program_id(0)
    last = pl.num_programs(0) - 1

    @pl.when(k == 0)
    def _init():
        acc_ref[...] = jnp.zeros_like(acc_ref)

    x = x_ref[...]
    w = w_ref[...]
    if tail_valid != tk:
        # The last K block sticks out past in_features; its VMEM contents are
        # unspecified (could be NaN/Inf), so zero the tail on BOTH operands.
        limit = jnp.where(k == last, tail_valid, tk)
        xcol = lax.broadcasted_iota(jnp.int32, x.shape, 1)
        x = jnp.where(xcol < limit, x, jnp.zeros_like(x))
        wrow = lax.broadcasted_iota(jnp.int32, w.shape, 0)
        w = jnp.where(wrow < limit, w, jnp.zeros_like(w))

    acc_ref[...] += jnp.dot(x, w, preferred_element_type=jnp.float32)

    @pl.when(k == last)
    def _finalize():
        o_ref[...] = (acc_ref[...] + b_ref[...].astype(jnp.float32)
                      ).astype(o_ref.dtype)


def _fc(feat, weight, bias, *, tk_max=512):
    """feat (N, F) @ weight(out, F)^T + bias(out,) -> (N, out)."""
    n_rows, in_f = feat.shape
    out_f = weight.shape[0]
    w_t = weight.T                      # (F, out) for the MXU
    b2d = bias.reshape(1, out_f)

    # K tiling: single full-dim block when F is small, otherwise 128-aligned
    # chunks with an in-kernel mask on the ragged tail.  This keeps the
    # with_avg_pool=False path (F = C*H*W) within VMEM on every generation.
    if in_f <= tk_max:
        tk = in_f
    else:
        tk = _round_up(tk_max, 128)
    nk = _cdiv(in_f, tk)
    tail_valid = in_f - (nk - 1) * tk

    kernel = functools.partial(_fc_kernel, tk=tk, tail_valid=tail_valid)

    return pl.pallas_call(
        kernel,
        out_shape=jax.ShapeDtypeStruct((n_rows, out_f), feat.dtype),
        grid_spec=pltpu.PrefetchScalarGridSpec(
            num_scalar_prefetch=0,
            grid=(nk,),
            in_specs=[
                pl.BlockSpec((n_rows, tk), lambda k: (0, k)),
                pl.BlockSpec((tk, out_f), lambda k: (k, 0)),
                pl.BlockSpec((1, out_f), lambda k: (0, 0)),
            ],
            out_specs=pl.BlockSpec((n_rows, out_f), lambda k: (0, 0)),
            scratch_shapes=[pltpu.VMEM((n_rows, out_f), jnp.float32)],
        ),
        compiler_params=pltpu.CompilerParams(
            dimension_semantics=("arbitrary",),
        ),
    )(feat, w_t, b2d)


# ---------------------------------------------------------------------------
# LinearNeck forward
# ---------------------------------------------------------------------------
def linear_neck(xs, weight, bias, *, with_avg_pool=True):
    """Mirrors LinearNeck.forward: xs is a length-1 list of NCHW tensors;
    returns [fc(avgpool(x).flatten(1))] of shape (N, out_channels)."""
    assert len(xs) == 1
    x = xs[0]
    n = x.shape[0]
    if with_avg_pool:
        feat = _global_avg_pool(x)          # (N, C)
    else:
        feat = x.reshape(n, -1)             # (N, C*H*W)
    return [_fc(feat, weight, bias)]


if __name__ == "__main__":
    key = jax.random.PRNGKey(0)

    # --- 1) main case: aligned spatial, with_avg_pool=True ------------------
    N, C, H, W = 2, 4, 16, 16
    out_channels = 8
    kx, kw, kb, k2, k3 = jax.random.split(key, 5)
    x = jax.random.normal(kx, (N, C, H, W), dtype=jnp.float32)
    weight = 0.01 * jax.random.normal(kw, (out_channels, C), dtype=jnp.float32)
    bias = 0.1 * jax.random.normal(kb, (out_channels,), dtype=jnp.float32)

    out0 = jax.block_until_ready(linear_neck([x], weight, bias)[0])
    ref0 = jnp.mean(x, axis=(2, 3)) @ weight.T + bias
    assert out0.shape == (N, out_channels)
    assert jnp.allclose(out0, ref0, atol=1e-4, rtol=1e-4)

    # --- 2) unaligned case: H*W=49 (masked hw tail), N*C=15 (partial tile) --
    x2 = jax.random.normal(k2, (3, 5, 7, 7), dtype=jnp.float32)
    w2 = 0.01 * jax.random.normal(kw, (6, 5), dtype=jnp.float32)
    b2 = 0.1 * jax.random.normal(kb, (6,), dtype=jnp.float32)
    out2 = jax.block_until_ready(linear_neck([x2], w2, b2)[0])
    ref2 = jnp.mean(x2, axis=(2, 3)) @ w2.T + b2
    assert jnp.allclose(out2, ref2, atol=1e-4, rtol=1e-4)

    # --- 3) with_avg_pool=False: F=C*H*W=600 exercises the K-tiled fc -------
    x3 = jax.random.normal(k3, (2, 6, 10, 10), dtype=jnp.float32)
    w3 = 0.01 * jax.random.normal(kw, (out_channels, 600), dtype=jnp.float32)
    b3 = 0.1 * jax.random.normal(kb, (out_channels,), dtype=jnp.float32)
    out3 = jax.block_until_ready(
        linear_neck([x3], w3, b3, with_avg_pool=False)[0])
    ref3 = x3.reshape(2, -1) @ w3.T + b3
    # Looser tolerance: default-precision f32 MXU matmuls (kernel and the XLA
    # reference) may use bf16 passes, so long contractions differ at ~1e-3.
    assert jnp.allclose(out3, ref3, atol=1e-2, rtol=1e-2)

    print("KERNEL_OK")
</pallas_src>

<mosaic_0001>
module attributes {stable_mosaic.version = 11 : i64} {
  func.func @_pool_kernel(%arg0: i32, %arg1: i32, %arg2: memref<8x256xf32, #tpu.memory_space<vmem>>, %arg3: memref<8x1xf32, #tpu.memory_space<vmem>>, %arg4: memref<8x128xf32, #tpu.memory_space<vmem>>) attributes {dimension_semantics = [#tpu.dimension_semantics<parallel>, #tpu.dimension_semantics<arbitrary>], iteration_bounds = array<i64: 1, 1>, scalar_prefetch = 0 : i64, scratch_operands = 1 : i64, tpu.core_type = #tpu.core_type<tc>, window_params = [{transform_indices = @transform_0, window_bounds = array<i64: 8, 256>}, {transform_indices = @transform_1, window_bounds = array<i64: 8, 1>}]} {
    %c0_i32 = arith.constant 0 : i32
    %0 = arith.cmpi eq, %arg1, %c0_i32 : i32
    %1 = arith.extui %0 : i1 to i32
    %c0_i32_0 = arith.constant 0 : i32
    %2 = arith.cmpi ne, %1, %c0_i32_0 : i32
    scf.if %2 {
      %cst = arith.constant 0.000000e+00 : f32
      %12 = vector.broadcast %cst : f32 to vector<8x128xf32>
      %c0_9 = arith.constant 0 : index
      %c0_10 = arith.constant 0 : index
      %13 = vector.load %arg4[%c0_9, %c0_10] : memref<8x128xf32, #tpu.memory_space<vmem>>, vector<8x128xf32>
      tpu.vector_store %arg4[%c0_9, %c0_10], %12 {strides = array<i32>} : memref<8x128xf32, #tpu.memory_space<vmem>>, vector<8x128xf32>,
    } else {
    }
    %c0 = arith.constant 0 : index
    %c0_1 = arith.constant 0 : index
    %3 = vector.load %arg4[%c0, %c0_1] : memref<8x128xf32, #tpu.memory_space<vmem>>, vector<8x128xf32>
    %c0_2 = arith.constant 0 : index
    %c0_3 = arith.constant 0 : index
    %4 = vector.load %arg2[%c0_2, %c0_3] : memref<8x256xf32, #tpu.memory_space<vmem>>, vector<8x128xf32>
    %5 = arith.addf %3, %4 : vector<8x128xf32>
    %c0_4 = arith.constant 0 : index
    %c128 = arith.constant 128 : index
    %6 = vector.load %arg2[%c0_4, %c128] : memref<8x256xf32, #tpu.memory_space<vmem>>, vector<8x128xf32>
    %7 = arith.addf %5, %6 : vector<8x128xf32>
    %c0_5 = arith.constant 0 : index
    %c0_6 = arith.constant 0 : index
    %8 = vector.load %arg4[%c0_5, %c0_6] : memref<8x128xf32, #tpu.memory_space<vmem>>, vector<8x128xf32>
    tpu.vector_store %arg4[%c0_5, %c0_6], %7 {strides = array<i32>} : memref<8x128xf32, #tpu.memory_space<vmem>>, vector<8x128xf32>,
    %c0_i32_7 = arith.constant 0 : i32
    %9 = arith.cmpi eq, %arg1, %c0_i32_7 : i32
    %10 = arith.extui %9 : i1 to i32
    %c0_i32_8 = arith.constant 0 : i32
    %11 = arith.cmpi ne, %10, %c0_i32_8 : i32
    scf.if %11 {
      %c0_9 = arith.constant 0 : index
      %c0_10 = arith.constant 0 : index
      %12 = vector.load %arg4[%c0_9, %c0_10] : memref<8x128xf32, #tpu.memory_space<vmem>>, vector<8x128xf32>
      %cst = arith.constant dense<0.000000e+00> : vector<8xf32>
      %13 = vector.multi_reduction <add>, %12, %cst [1] : vector<8x128xf32> to vector<8xf32>
      %14 = vector.shape_cast %13 : vector<8xf32> to vector<8x1xf32>
      %cst_11 = arith.constant 3.906250e-03 : f32
      %15 = vector.broadcast %cst_11 : f32 to vector<8x1xf32>
      %16 = arith.mulf %14, %15 : vector<8x1xf32>
      %c0_12 = arith.constant 0 : index
      %c0_13 = arith.constant 0 : index
      %17 = vector.load %arg3[%c0_12, %c0_13] : memref<8x1xf32, #tpu.memory_space<vmem>>, vector<8x1xf32>
      tpu.vector_store %arg3[%c0_12, %c0_13], %16 {strides = array<i32>} : memref<8x1xf32, #tpu.memory_space<vmem>>, vector<8x1xf32>,
    } else {
    }
    return
  }
  func.func @transform_0(%arg0: i32, %arg1: i32) -> (i32, i32) {
    %c0_i32 = arith.constant 0 : i32
    return %arg0, %arg1 : i32, i32
  }
  func.func @transform_1(%arg0: i32, %arg1: i32) -> (i32, i32) {
    %c0_i32 = arith.constant 0 : i32
    %c0_i32_0 = arith.constant 0 : i32
    return %arg0, %c0_i32 : i32, i32
  }
}

</mosaic_0001>

<bundles_post_ra>
// kernel: tpu_custom_call.1
= control target key start
LH: loop header
LB: loop body
LE: loop exit
PB: predicated region body
PF: predicated region fallthrough
CT: control target
= control target key end

     0   :  { %6 = vsyncpa [#allocation4], 0  ;;  %s70_s6 = smov [#allocation3]   ;;  %s96_s0 = inlined_call_operand.hbm [shape: f32[8,256], index: 0, kind: input, shape index: {}]   ;;  %s97_s1 = inlined_call_operand.vmem [shape: f32[8,1], index: 1, kind: output, shape index: {}]  }
   0x1   :  { %s13_s7 = sshll.u32 %s70_s6, 4  ;;  %s46_s10 = scalar_lea.hbm %s96_s0, 256  ;;  %s14_s7 = int_to_ptr.vmem [resolvable:$true] %s13_s7 }
   0x2   :  { %p47_p0 = scmp.ne.s32.totalorder %s96_s0, %s46_s10  ;;  %p50_p1 = scmp.lt.u32.totalorder %s46_s10, %s96_s0 }
   0x4   :  { %p52_p2 = pnand %p50_p1, %p47_p0 }
   0x6   :  { %55 = shalt.err (!%p52_p2)
}
   0x7   :  { %s56_s15 = scalar_lea.vmem %s14_s7, 256  ;;  %p61_p4 = scmp.lt.s32.totalorder %s14_s7, %s14_s7 }
   0x8   :  { %p57_p3 = scmp.ne.s32.totalorder %s14_s7, %s56_s15  ;;  %p62_p5 = scmp.lt.s32.totalorder %s56_s15, %s56_s15 }
   0xa   :  { %p63_p6 = por %p62_p5, %p61_p4 }
   0xc   :  { %p64_p7 = pnand %p63_p6, %p57_p3 }
   0xe   :  { %67 = shalt.err (!%p64_p7)
}
   0xf   :  { %16 = dma.hbm_to_vmem [thread:$0]  %s96_s0, 256, %s14_s7, [#allocation4]  }
  0x10   :  { %68 = dma.done.wait [#allocation4], 256  }
  0x11   :  { %69 = vsyncadd [#allocation4], 4294967040  ;;  %v26_v0 = vld [vmem:[#allocation3] sm:$0xff]  ;;  %v28_v1 = vld [vmem:[#allocation3 + $0x8] sm:$0xff]  ;;  %vm38_vm0 = vcmask 7168  }
  0x12   :  { %v29_v2 = vadd.f32 %v28_v1, %v26_v0 }
  0x14   :  { %35 = vadd.xlane.f32.xlu0 %v29_v2 }
  0xa1   :  { %v36_v3 = vpop.xlane.xlu0 %35 }
  0xa2   :  { %v37_v4 = vmul.f32 0.00390625, %v36_v3 }
  0xa4   :  { %39 = vst.msk [vmem:[%s97_s1] sm:$0xff] %vm38_vm0, %v37_v4 }
  0xa5   :  { %44 = vsyncpa [#allocation4], 1 }

</bundles_post_ra>
